<compile_context>
chip_gen: v5e
topology: v5e:2x2
jax: 0.10.0
libtpu: 0.0.40
codegen_flags: <defaults>
</compile_context>

<pallas_src>
import jax
import jax.numpy as jnp
from jax.experimental import pallas as pl
from jax.experimental.pallas import tpu as pltpu

NUMBER = 10000  # the `number` global / base of the RoPE frequencies


def _rope_kernel(x_ref, cos_ref, sin_ref, o_ref):
    # x_ref / o_ref: (TS, HD) tiles of the (B, S, H*D) slab (batch dim squeezed)
    # cos_ref      : (TS, HD) f32, cos((offset+s) * theta_{(lane % D)//2})
    # sin_ref      : (TS, HD) f32, sin(...) with the pair sign (-1 even, +1 odd) folded in
    x = x_ref[...]
    TS, HD = x.shape

    # swap_pairs(x)[2k] = x[2k+1], swap_pairs(x)[2k+1] = x[2k]
    # Built from two cyclic lane rolls + parity select; the wrap lanes are never
    # selected (lane 0 is even, lane HD-1 is odd), and pairs never cross head
    # boundaries since D is even.
    x_next = pltpu.roll(x, shift=HD - 1, axis=1)   # y[d] = x[d+1]
    x_prev = pltpu.roll(x, shift=1, axis=1)        # y[d] = x[d-1]
    lane = jax.lax.broadcasted_iota(jnp.int32, (TS, HD), 1)
    x_swap = jnp.where((lane & 1) == 0, x_next, x_prev)

    out = x.astype(jnp.float32) * cos_ref[...] + x_swap.astype(jnp.float32) * sin_ref[...]
    o_ref[...] = out.astype(o_ref.dtype)


def _pick_row_tile(S, HD):
    """Row tile: multiple of 8 (or the full S), capped so each f32 block is
    ~<= 4 MiB and the double-buffered pipeline fits VMEM.  Does NOT need to
    divide S — the grid uses cdiv and Pallas masks the partial edge block."""
    cap = max(8, ((4 << 20) // max(1, HD * 4)) // 8 * 8)
    if S <= cap:
        return S
    return cap


def rope_pos_encoding(x, offset=0, number=NUMBER):
    """Pallas equivalent of RoPEPosEncoding(head_dim, number).forward(x, offset).

    x: (B, S, H, D), D even. Returns same shape/dtype.
    """
    assert x.ndim == 4
    B, S, H, D = x.shape
    assert D % 2 == 0
    HD = H * D

    # Contiguous view: (B, S, H, D) -> (B, S, H*D). No transpose, no extra HBM pass.
    x_slab = x.reshape(B, S, HD)

    # --- precompute cos / sign-folded sin tables, shape (S, H*D), f32 ---------
    theta = 1.0 / (jnp.float32(number) ** (jnp.arange(0, D, 2, dtype=jnp.float32) / D))
    pos = jnp.float32(offset) + jnp.arange(S, dtype=jnp.float32)          # (S,)
    ang = pos[:, None] * theta[None, :]                                   # (S, D//2)
    cos_d = jnp.repeat(jnp.cos(ang), 2, axis=1)                           # (S, D)
    pair_sign = jnp.tile(jnp.array([-1.0, 1.0], jnp.float32), D // 2)     # (-1 even, +1 odd)
    sin_d = jnp.repeat(jnp.sin(ang), 2, axis=1) * pair_sign[None, :]      # (S, D)
    cos_t = jnp.tile(cos_d, (1, H))                                       # (S, H*D)
    sin_t = jnp.tile(sin_d, (1, H))                                       # (S, H*D)

    # --- tiling / VMEM budget -------------------------------------------------
    TS = _pick_row_tile(S, HD)
    itemsize = jnp.dtype(x.dtype).itemsize
    # in + out (x dtype) and cos + sin (f32), each double-buffered, plus headroom
    vmem_est = 2 * (2 * TS * HD * itemsize + 2 * TS * HD * 4) + (4 << 20)
    vmem_limit = int(min(max(vmem_est, 32 << 20), 64 << 20))

    out_slab = pl.pallas_call(
        _rope_kernel,
        out_shape=jax.ShapeDtypeStruct((B, S, HD), x.dtype),
        grid=(pl.cdiv(S, TS), B),
        in_specs=[
            pl.BlockSpec((None, TS, HD), lambda s, b: (b, s, 0)),   # x
            pl.BlockSpec((TS, HD), lambda s, b: (s, 0)),            # cos (resident across b)
            pl.BlockSpec((TS, HD), lambda s, b: (s, 0)),            # sin (resident across b)
        ],
        out_specs=pl.BlockSpec((None, TS, HD), lambda s, b: (b, s, 0)),
        compiler_params=pltpu.CompilerParams(
            dimension_semantics=("parallel", "parallel"),
            vmem_limit_bytes=vmem_limit,
        ),
    )(x_slab, cos_t, sin_t)

    return out_slab.reshape(B, S, H, D)


def _rope_reference(x, offset=0, number=NUMBER):
    """Pure-JAX port of the PyTorch forward, for verification."""
    B, S, H, D = x.shape
    theta = 1.0 / (jnp.float32(number) ** (jnp.arange(0, D, 2, dtype=jnp.float32) / D))
    pos = jnp.float32(offset) + jnp.arange(S, dtype=jnp.float32)
    ang = jnp.outer(pos, theta).reshape(1, S, 1, D // 2)
    cos, sin = jnp.cos(ang), jnp.sin(ang)
    xp = x.reshape(B, S, H, D // 2, 2).astype(jnp.float32)
    r0 = xp[..., 0] * cos - xp[..., 1] * sin
    r1 = xp[..., 0] * sin + xp[..., 1] * cos
    return jnp.stack([r0, r1], axis=-1).reshape(B, S, H, D).astype(x.dtype)


if __name__ == "__main__":
    # RoPEPosEncoding(head_dim=32, number=10000); x: [batch=2, seq=8, heads=4, head_dim=32]
    key = jax.random.PRNGKey(0)
    x = jax.random.normal(key, (2, 8, 4, 32), dtype=jnp.float32)
    offset = 3

    out = rope_pos_encoding(x, offset=offset)
    out = jax.block_until_ready(out)

    ref = _rope_reference(x, offset=offset)
    assert out.shape == x.shape and out.dtype == x.dtype
    assert jnp.allclose(out, ref, atol=1e-5, rtol=1e-5), float(jnp.max(jnp.abs(out - ref)))

    print("KERNEL_OK")
</pallas_src>

<mosaic_0001>
module attributes {stable_mosaic.version = 11 : i64} {
  func.func @_rope_kernel(%arg0: i32, %arg1: i32, %arg2: memref<1x8x128xf32, #tpu.memory_space<vmem>>, %arg3: memref<8x128xf32, #tpu.memory_space<vmem>>, %arg4: memref<8x128xf32, #tpu.memory_space<vmem>>, %arg5: memref<1x8x128xf32, #tpu.memory_space<vmem>>) attributes {dimension_semantics = [#tpu.dimension_semantics<parallel>, #tpu.dimension_semantics<parallel>], iteration_bounds = array<i64: 1, 2>, scalar_prefetch = 0 : i64, scratch_operands = 0 : i64, tpu.core_type = #tpu.core_type<tc>, window_params = [{transform_indices = @transform_0, window_bounds = array<i64: 1, 8, 128>}, {transform_indices = @transform_1, window_bounds = array<i64: 8, 128>}, {transform_indices = @transform_2, window_bounds = array<i64: 8, 128>}, {transform_indices = @transform_3, window_bounds = array<i64: 1, 8, 128>}]} {
    %c0 = arith.constant 0 : index
    %c0_0 = arith.constant 0 : index
    %c0_1 = arith.constant 0 : index
    %0 = vector.load %arg2[%c0, %c0_0, %c0_1] : memref<1x8x128xf32, #tpu.memory_space<vmem>>, vector<1x8x128xf32>
    %1 = vector.shape_cast %0 : vector<1x8x128xf32> to vector<8x128xf32>
    %c127_i32 = arith.constant 127 : i32
    %2 = tpu.dynamic_rotate %1 by %c127_i32 dim 1 : vector<8x128xf32>, i32 -> vector<8x128xf32>
    %c1_i32 = arith.constant 1 : i32
    %3 = tpu.dynamic_rotate %1 by %c1_i32 dim 1 : vector<8x128xf32>, i32 -> vector<8x128xf32>
    %4 = tpu.iota {dimensions = array<i32: 1>} : vector<8x128xi32>
    %c1_i32_2 = arith.constant 1 : i32
    %5 = vector.broadcast %c1_i32_2 : i32 to vector<8x128xi32>
    %6 = arith.andi %4, %5 : vector<8x128xi32>
    %c0_i32 = arith.constant 0 : i32
    %7 = vector.broadcast %c0_i32 : i32 to vector<8x128xi32>
    %8 = arith.cmpi eq, %6, %7 : vector<8x128xi32>
    %9 = arith.select %8, %2, %3 : vector<8x128xi1>, vector<8x128xf32>
    %c0_3 = arith.constant 0 : index
    %c0_4 = arith.constant 0 : index
    %10 = vector.load %arg3[%c0_3, %c0_4] : memref<8x128xf32, #tpu.memory_space<vmem>>, vector<8x128xf32>
    %11 = arith.mulf %1, %10 : vector<8x128xf32>
    %c0_5 = arith.constant 0 : index
    %c0_6 = arith.constant 0 : index
    %12 = vector.load %arg4[%c0_5, %c0_6] : memref<8x128xf32, #tpu.memory_space<vmem>>, vector<8x128xf32>
    %13 = arith.mulf %9, %12 : vector<8x128xf32>
    %14 = arith.addf %11, %13 : vector<8x128xf32>
    %c0_7 = arith.constant 0 : index
    %c0_8 = arith.constant 0 : index
    %c0_9 = arith.constant 0 : index
    %15 = vector.load %arg5[%c0_7, %c0_8, %c0_9] : memref<1x8x128xf32, #tpu.memory_space<vmem>>, vector<1x8x128xf32>
    %16 = vector.shape_cast %15 : vector<1x8x128xf32> to vector<8x128xf32>
    %17 = vector.shape_cast %14 : vector<8x128xf32> to vector<1x8x128xf32>
    tpu.vector_store %arg5[%c0_7, %c0_8, %c0_9], %17 {strides = array<i32>} : memref<1x8x128xf32, #tpu.memory_space<vmem>>, vector<1x8x128xf32>,
    return
  }
  func.func @transform_0(%arg0: i32, %arg1: i32) -> (i32, i32, i32) {
    %c0_i32 = arith.constant 0 : i32
    %c0_i32_0 = arith.constant 0 : i32
    return %arg1, %arg0, %c0_i32 : i32, i32, i32
  }
  func.func @transform_1(%arg0: i32, %arg1: i32) -> (i32, i32) {
    %c0_i32 = arith.constant 0 : i32
    %c0_i32_0 = arith.constant 0 : i32
    return %arg0, %c0_i32 : i32, i32
  }
  func.func @transform_2(%arg0: i32, %arg1: i32) -> (i32, i32) {
    %c0_i32 = arith.constant 0 : i32
    %c0_i32_0 = arith.constant 0 : i32
    return %arg0, %c0_i32 : i32, i32
  }
  func.func @transform_3(%arg0: i32, %arg1: i32) -> (i32, i32, i32) {
    %c0_i32 = arith.constant 0 : i32
    %c0_i32_0 = arith.constant 0 : i32
    return %arg1, %arg0, %c0_i32 : i32, i32, i32
  }
}

</mosaic_0001>

<bundles_post_ra>
// kernel: tpu_custom_call.1
= control target key start
LH: loop header
LB: loop body
LE: loop exit
PB: predicated region body
PF: predicated region fallthrough
CT: control target
= control target key end

     0   :  { %8 = vsyncpa [#allocation3], 0  ;;  %s830_s0 = inlined_call_operand.hbm [shape: f32[2,8,128], index: 0, kind: input, shape index: {}]   ;;  %s831_s1 = inlined_call_operand.hbm [shape: f32[8,128], index: 1, kind: input, shape index: {}]   ;;  %s832_s2 = inlined_call_operand.hbm [shape: f32[8,128], index: 2, kind: input, shape index: {}]   ;;  %s833_s3 = inlined_call_operand.hbm [shape: f32[2,8,128], index: 3, kind: output, shape index: {}]  }
   0x1   :  { %10 = vsyncpa [#allocation3 + $0x1], 0 }
   0x2   :  { %11 = vsyncpa [#allocation6], 0 }
   0x3   :  { %12 = vsyncpa [#allocation4], 0 }
   0x4   :  { %14 = vsyncpa [#allocation4 + $0x1], 0  ;;  %s688_s12 = smov 0   ;;  %s690_s13 = smov 0  }
   0x5   :  { %s692_s14 = smov 0   ;;  %s694_s15 = smov 0  }
   0x6   :  { %s696_s16 = smov 0   ;;  %s698_s17 = smov 0  }
   0x7 LB: > { %s384_s18 = sadd.s32 4294967295, %s662_s17   ;;  %s385_s19 = sadd.s32 4294967294, %s662_s17   ;;  %s662_s17 = sphi %s698_s17, %s20_s17   ;;  %s658_s16 = sphi %s696_s16, %s843_s16   ;;  %s654_s15 = sphi %s694_s15, %s842_s15   ;;  %s650_s14 = sphi %s692_s14, %s841_s14   ;;  %s646_s13 = sphi %s690_s13, %s840_s13   ;;  %s642_s12 = sphi %s688_s12, %s839_s12  }
   0x8   : > { %p54_p0 = scmp.ne.s32.totalorder %s646_s13, %s642_s12  ;;  %p722_p1 = scmp.eq.s32.totalorder %s384_s18, 0 }
   0x9   : > { %p138_p2 = scmp.eq.s32.totalorder %s385_s19, 1  ;;  %p386_p4 = scmp.ge.s32.totalorder %s662_s17, 1 }
   0xa   : > { %p728_p3 = por %p722_p1, %p54_p0  ;;  %p145_p6 = scmp.lt.s32.totalorder %s662_s17, 3 }
   0xb   : > { %p733_p5 = por %p138_p2, %p54_p0  ;;  %s159_s25 = sshll.u32 %s831_s1, 4  ;;  %s160_s25 = int_to_ptr.hbm [resolvable:$true] %s159_s25 }
   0xc   : > { %p741_p7 = pnand %p386_p4, %p145_p6  ;;  %p389_p8 = scmp.ge.s32.totalorder %s662_s17, 2 }
   0xd   : > { %s664_s27 = smov [#allocation5]   ;;  %s173_s4 = sshll.u32 %s832_s2, 4  ;;  %s174_s4 = int_to_ptr.hbm [resolvable:$true] %s173_s4 }
   0xe   : > { %p413_p9 = pneg %p741_p7  ;;  %s161_s28 = sshll.u32 %s664_s27, 4  ;;  %s162_s28 = int_to_ptr.vmem [resolvable:$true] %s161_s28 }
   0xf   : > { %s665_s5 = smov [#allocation7]   ;;  %p132_p11 = scmp.eq.s32.totalorder %s384_s18, 1 }
  0x10   : > { %p414_p10 = pnand %p413_p9, %p722_p1  ;;  %s175_s6 = sshll.u32 %s665_s5, 4  ;;  %s176_s6 = int_to_ptr.vmem [resolvable:$true] %s175_s6 }
  0x11   : > { %s29_s7 = sadd.s32 1, %s658_s16  ;;  %s41_s8 = sadd.s32 1, %s650_s14 }
  0x12   : > { %416 = dma.hbm_to_vmem [thread:$0]  (!%p414_p10), %s160_s25, 128, %s162_s28, [#allocation6]  }
  0x13   : > { %419 = dma.hbm_to_vmem [thread:$0]  (!%p414_p10), %s174_s4, 128, %s176_s6, [#allocation6]  }
  0x14   : > { %p30_p12 = scmp.ge.s32.totalorder %s29_s7, 2  ;;  %p48_p13 = scmp.ne.s32.totalorder %s650_s14, %s646_s13 }
  0x15   : > { %p49_p0 = scmp.eq.s32.totalorder %s662_s17, 0  ;;  %p430_p4 = scmp.lt.s32.totalorder %s662_s17, 2 }
  0x16   : > { %s845_s7 = smov (%p30_p12, %s29_s7), 0  ;;  %p760_p2 = por %p132_p11, %p48_p13 }
  0x17   : > { %s36_s10 = ssub.s32 %s658_s16, %s845_s7  ;;  %s186_s11 = sand.u32 1, %s650_s14  }
  0x18   : > { %p39_p6 = scmp.eq.s32.totalorder %s36_s10, 0  ;;  %p50_p9 = por %p49_p0, %p48_p13 }
  0x19   : > { %s390_s19 = sshll.u32 %s186_s11, 3  ;;  %s391_s18 = sshll.u32 %s658_s16, 3 }
  0x1a   : > { %s770_s23 = scalar_select %p39_p6, %s650_s14, %s41_s8  }
  0x1b   : > { %s195_s27 = scalar_lea.hbm %s830_s0, %s391_s18  ;;  %s190_s29 = scalar_lea.vmem [#allocation2], %s390_s19 }
  0x1c   : > { %s197_s28 = sshll.u32 %s195_s27, 4  ;;  %s199_s30 = sshll.u32 %s190_s29, 4  ;;  %s198_s28 = int_to_ptr.hbm [resolvable:$true] %s197_s28  ;;  %s200_s30 = int_to_ptr.vmem [resolvable:$true] %s199_s30 }
  0x1d   : > { %p421_p10 = pnand %p430_p4, %p50_p9  ;;  %s187_s4 = scalar_lea.sflag [#allocation3], %s186_s11 }
  0x1e   : > { %208 = sbr.rel (%p741_p7) target bundleno = 170 (0xaa), region = 32  ;;  %s780_s5 = sand.u32 (!%p741_p7), 1, %s646_s13  }
  0x1f   : > { %423 = dma.hbm_to_vmem [thread:$0]  (!%p421_p10), %s198_s28, 128, %s200_s30, %s187_s4  }
  0x20   : > { %s393_s6 = sshll.u32 (!%p741_p7), %s780_s5, 3  ;;  %s211_s8 = scalar_lea.sflag (!%p741_p7), [#allocation3], %s780_s5 }
  0x21   : > { %s214_s10 = scalar_lea.vmem (!%p741_p7), [#allocation2], %s393_s6 }
  0x23   : > { %629 = dma.done.wait (%p728_p3), %s211_s8, 128  }
  0x24   : > { %631 = vsyncadd (%p728_p3), %s211_s8, 4294967168 }
  0x25   : > { %633 = dma.done.wait (%p722_p1), [#allocation6], 256  }
  0x26   : > { %635 = vsyncadd (%p722_p1), [#allocation6], 4294967040  ;;  %v248_v0 = vld [vmem:[%s214_s10] sm:$0xff]  ;;  %s666_s26 = smov 127   ;;  %s667_s11 = smov 1   ;;  %v253_v1 = vlaneseq  ;;  %v258_v5 = vld [vmem:[#allocation5] sm:$0xff] }
  0x27   : > { %249 = vrot.lane.b32.xlu0 %v248_v0, %s666_s26  ;;  %s398_s19 = sshll.u32 %s654_s15, 3  ;;  %v260_v6 = vld [vmem:[#allocation7] sm:$0xff]  ;;  %v259_v7 = vmul.f32 %v258_v5, %v248_v0  ;;  %s247_s20 = scalar_lea.vmem [#allocation8], %s393_s6 }
  0x28   : > { %v254_v2 = vand.u32 127, %v253_v1  ;;  %s276_s24 = scalar_lea.hbm %s833_s3, %s398_s19  ;;  %s278_s25 = sshll.u32 %s247_s20, 4  ;;  %s279_s25 = int_to_ptr.vmem [resolvable:$true] %s278_s25 }
  0x29   : > { %s280_s27 = sshll.u32 %s276_s24, 4  ;;  %s265_s15 = scalar_lea.sflag [#allocation4], %s780_s5  ;;  %s281_s27 = int_to_ptr.hbm [resolvable:$true] %s280_s27 }
  0x2a   : > { %v255_v4 = vand.u32 1, %v254_v2  ;;  %s590_s28 = sshra.s32 %s281_s27, 4  ;;  %s596_s8 = scalar_lea.hbm %s833_s3, 16  ;;  %s591_s28 = int_to_ptr.hbm [resolvable:$true] %s590_s28 }
  0x2b   : > { %s592_s29 = scalar_lea.hbm %s591_s28, 8  ;;  %p597_p11 = scmp.lt.s32.totalorder %s591_s28, %s833_s3 }
  0x2c   : > { %vm256_vm0 = vcmp.eq.s32.totalorder %v255_v4, 0  ;;  %p593_p1 = scmp.ne.s32.totalorder %s591_s28, %s592_s29  ;;  %p598_p12 = scmp.lt.s32.totalorder %s596_s8, %s592_s29 }
  0x2e   : > { %p594_p3 = pnand %p593_p1, %p760_p2  ;;  %p599_p13 = por %p598_p12, %p597_p11 }
  0x2f   : > { %251 = vrot.lane.b32.xlu0 %v248_v0, %s667_s11 }
  0x30   : > { %p595_p7 = pneg %p594_p3 }
  0x32   : > { %p600_p0 = pnand %p599_p13, %p595_p7 }
  0x99   : > { %v250_v3 = vpop.permute.xlu0 %249 }
  0xa1   : > { %v252_v8 = vpop.permute.xlu0 %251 }
  0xa2   : > { %v257_v9 = vsel %vm256_vm0, %v250_v3, %v252_v8 }
  0xa3   : > { %v261_v10 = vmul.f32 %v260_v6, %v257_v9 }
  0xa5   : > { %v262_v11 = vadd.f32 %v261_v10, %v259_v7 }
  0xa7   : > { %263 = vst [vmem:[%s247_s20] sm:$0xff] %v262_v11 }
  0xa8   : > { %603 = shalt.err (!%p600_p0)
}
  0xa9   : > { %411 = dma.vmem_to_hbm [thread:$0]  (%p760_p2), %s279_s25, 128, %s281_s27, %s265_s15  }
  0xaa PF: > { %s292_s5 = sand.u32 1, %s642_s12   ;;  %p425_p4 = pnand %p389_p8, %p733_p5 }
  0xab   : > { %s293_s26 = scalar_lea.sflag [#allocation4], %s292_s5 }
  0xac   : > { %p426_p6 = pneg %p425_p4 }
  0xae   : > { %637 = dma.done.wait (%p426_p6), %s293_s26, 128  }
  0xaf   : > { %639 = vsyncadd (%p426_p6), %s293_s26, 4294967168  ;;  %s20_s17 = sadd.s32 1, %s662_s17   ;;  %s839_s12 = smov %s646_s13 }
  0xb0   : > { %p17_p9 = scmp.ge.s32.totalorder %s20_s17, 4   ;;  %s840_s13 = smov %s650_s14 }
  0xb1   : > { %s841_s14 = smov %s770_s23  ;;  %s842_s15 = smov %s658_s16 }
  0xb2   : > { %s843_s16 = smov %s845_s7  ;;  %19 = sbr.rel (!%p17_p9) target bundleno = 7 (0x7), region = 87 }
  0xb7   :  { %299 = vsyncpa [#allocation3], 1 }
  0xb8   :  { %301 = vsyncpa [#allocation3 + $0x1], 1 }
  0xb9   :  { %302 = vsyncpa [#allocation6], 1 }
  0xba   :  { %303 = vsyncpa [#allocation4], 1 }
  0xbb   :  { %305 = vsyncpa [#allocation4 + $0x1], 1 }

</bundles_post_ra>
